<compile_context>
chip_gen: v7x
topology: tpu7x:2x2x1
jax: 0.10.0
libtpu: 0.0.40
codegen_flags: <defaults>
</compile_context>

<pallas_src>
import jax
import jax.numpy as jnp
from jax.experimental import pallas as pl
from jax.experimental.pallas import tpu as pltpu

_LANES = 128            # lane width of a vreg
_MAX_BLOCK_ROWS = 2048  # 2048 x 128 f32 = 1 MiB per block
_FAST_PATH_ELEMS = 1024  # below this, skip pallas_call entirely


def _round_up(x, m):
    return ((x + m - 1) // m) * m


def _linear_fma_kernel(params_ref, x_ref, o_ref):
    # params_ref: SMEM (2,) f32 -> [w, b] scalars
    # x_ref / o_ref: (block_rows, 128) lane-dense VMEM tiles in caller dtype
    w = params_ref[0]
    b = params_ref[1]
    xv = x_ref[...].astype(jnp.float32)      # compute in f32 (VALU slack)
    o_ref[...] = (xv * w + b).astype(o_ref.dtype)


def linear_forward(x, weight, bias, *, force_kernel=False):
    """Pallas-backed equivalent of LinearModel.forward (nn.Linear(1, 1)).

    x:      (N, 1)  float32 / bfloat16
    weight: (1, 1)  (PyTorch [out_features, in_features] layout)
    bias:   (1,)
    returns (N, 1)  in x.dtype
    """
    n, in_f = x.shape
    out_f, w_in = weight.shape
    assert in_f == 1 and out_f == 1 and w_in == 1, (
        "kernel specialized for the 1->1 LinearModel")

    dtype = x.dtype
    n_elems = n * in_f

    # ---- small-N fast path: launch overhead >> work, fuse into plain XLA.
    if n_elems < _FAST_PATH_ELEMS and not force_kernel:
        y = x * weight.reshape(()) + bias.reshape(())
        return y.astype(dtype)

    # Scalars [w, b] packed into a tiny SMEM array (always f32).
    params = jnp.stack([weight.reshape(()), bias.reshape(())]).astype(jnp.float32)

    # Lane-dense layout in the caller's dtype; pad only to a multiple of 128
    # (skipped when already aligned -> reshape is a free bitcast).
    flat = x.reshape(-1)
    padded_elems = _round_up(n_elems, _LANES)
    if padded_elems != n_elems:
        flat = jnp.pad(flat, (0, padded_elems - n_elems))
    rows = padded_elems // _LANES
    slab = flat.reshape(rows, _LANES)

    # Sublane alignment: 8 rows for f32, 16 for bf16, 32 for int8/fp8.
    itemsize = jnp.dtype(dtype).itemsize
    row_align = max(8, 32 // itemsize)

    # Split rows so the grid has >= 2 steps when possible (v7x: both TCs
    # stream), capped at _MAX_BLOCK_ROWS to stay inside every VMEM budget.
    block_rows = min(_MAX_BLOCK_ROWS, _round_up(pl.cdiv(rows, 2), row_align))
    grid = (pl.cdiv(rows, block_rows),)

    cost = pl.CostEstimate(
        flops=2 * rows * _LANES,
        transcendentals=0,
        bytes_accessed=2 * rows * _LANES * itemsize,
    )

    out = pl.pallas_call(
        _linear_fma_kernel,
        out_shape=jax.ShapeDtypeStruct((rows, _LANES), dtype),
        grid=grid,
        in_specs=[
            pl.BlockSpec(memory_space=pltpu.MemorySpace.SMEM),      # [w, b]
            pl.BlockSpec((block_rows, _LANES), lambda i: (i, 0)),   # x slab
        ],
        out_specs=pl.BlockSpec((block_rows, _LANES), lambda i: (i, 0)),
        compiler_params=pltpu.CompilerParams(
            dimension_semantics=("parallel",),   # row axis shards across TCs
        ),
        cost_estimate=cost,
    )(params, slab)

    # Undo lane reshape / tail padding (no-op slice when already aligned).
    y = out.reshape(-1)[:n_elems].reshape(n, out_f)
    return y


if __name__ == "__main__":
    in_features, out_features = 1, 1

    # Module __init__ semantics: nn.init.constant_(weight, 0.0); constant_(bias, 0.0)
    weight = jnp.zeros((out_features, in_features), dtype=jnp.float32)
    bias = jnp.zeros((out_features,), dtype=jnp.float32)

    key = jax.random.PRNGKey(0)
    kx, kw, kb, kx2 = jax.random.split(key, 4)

    # 1) Literal training-loop shape (N=8): default path (fused XLA fast path).
    x = jax.random.normal(kx, (8, in_features), dtype=jnp.float32)
    y = jax.block_until_ready(linear_forward(x, weight, bias))
    y_ref = x @ weight.T + bias[None, :]
    assert y.shape == (8, out_features)
    assert jnp.allclose(y, y_ref, atol=1e-6), "mismatch (fast path, zero params)"

    # 2) Same tiny input forced through the Pallas kernel (degenerate 1-row slab).
    y_k = jax.block_until_ready(linear_forward(x, weight, bias, force_kernel=True))
    assert jnp.allclose(y_k, y_ref, atol=1e-6), "mismatch (kernel path, zero params)"

    # 3) Larger N with non-trivial params: multi-block grid + ragged last block
    #    (3000 -> pad to 3072 elems, 24 rows, block_rows=16, grid=2).
    w2 = jax.random.normal(kw, (out_features, in_features), dtype=jnp.float32)
    b2 = jax.random.normal(kb, (out_features,), dtype=jnp.float32)
    x2 = jax.random.normal(kx2, (3000, in_features), dtype=jnp.float32)
    y2 = jax.block_until_ready(linear_forward(x2, w2, b2))
    y2_ref = x2 @ w2.T + b2[None, :]
    assert jnp.allclose(y2, y2_ref, atol=1e-6), "mismatch (kernel path, random params)"

    # 4) bf16 input exercises the native-dtype load/store path ((16,128) tiles).
    x3 = x2.astype(jnp.bfloat16)
    y3 = jax.block_until_ready(linear_forward(x3, w2, b2))
    y3_ref = (x3.astype(jnp.float32) @ w2.T + b2[None, :]).astype(jnp.bfloat16)
    assert y3.dtype == jnp.bfloat16
    assert jnp.allclose(y3.astype(jnp.float32), y3_ref.astype(jnp.float32),
                        atol=5e-2), "mismatch (bf16 kernel path)"

    print("KERNEL_OK")
</pallas_src>

<mosaic_0001>
module attributes {stable_mosaic.version = 11 : i64} {
  func.func @_linear_fma_kernel(%arg0: i32, %arg1: memref<2xf32, #tpu.memory_space<smem>>, %arg2: memref<8x128xf32, #tpu.memory_space<vmem>>, %arg3: memref<8x128xf32, #tpu.memory_space<vmem>>) attributes {dimension_semantics = [#tpu.dimension_semantics<parallel>], iteration_bounds = array<i64: 1>, scalar_prefetch = 0 : i64, scratch_operands = 0 : i64, tpu.core_type = #tpu.core_type<tc>, window_params = [{transform_indices = @transform_0, window_bounds = array<i64: 2>}, {transform_indices = @transform_1, window_bounds = array<i64: 8, 128>}, {transform_indices = @transform_2, window_bounds = array<i64: 8, 128>}]} {
    %c0 = arith.constant 0 : index
    %0 = memref.load %arg1[%c0] : memref<2xf32, #tpu.memory_space<smem>>
    %c1 = arith.constant 1 : index
    %1 = memref.load %arg1[%c1] : memref<2xf32, #tpu.memory_space<smem>>
    %c0_0 = arith.constant 0 : index
    %c0_1 = arith.constant 0 : index
    %2 = vector.load %arg2[%c0_0, %c0_1] : memref<8x128xf32, #tpu.memory_space<vmem>>, vector<8x128xf32>
    %3 = vector.broadcast %0 : f32 to vector<8x128xf32>
    %4 = arith.mulf %2, %3 : vector<8x128xf32>
    %5 = vector.broadcast %1 : f32 to vector<8x128xf32>
    %6 = arith.addf %4, %5 : vector<8x128xf32>
    %c0_2 = arith.constant 0 : index
    %c0_3 = arith.constant 0 : index
    %7 = vector.load %arg3[%c0_2, %c0_3] : memref<8x128xf32, #tpu.memory_space<vmem>>, vector<8x128xf32>
    tpu.vector_store %arg3[%c0_2, %c0_3], %6 {strides = array<i32>} : memref<8x128xf32, #tpu.memory_space<vmem>>, vector<8x128xf32>,
    return
  }
  func.func @transform_0(%arg0: i32) -> i32 {
    %c0_i32 = arith.constant 0 : i32
    %c0_i32_0 = arith.constant 0 : i32
    return %c0_i32 : i32
  }
  func.func @transform_1(%arg0: i32) -> (i32, i32) {
    %c0_i32 = arith.constant 0 : i32
    %c0_i32_0 = arith.constant 0 : i32
    return %arg0, %c0_i32 : i32, i32
  }
  func.func @transform_2(%arg0: i32) -> (i32, i32) {
    %c0_i32 = arith.constant 0 : i32
    %c0_i32_0 = arith.constant 0 : i32
    return %arg0, %c0_i32 : i32, i32
  }
}

</mosaic_0001>

<bundles_post_ra>
// kernel: tpu_custom_call.1
= control target key start
LH: loop header
LB: loop body
LE: loop exit
PB: predicated region body
PF: predicated region fallthrough
CT: control target
= control target key end

     0   :  { %7 = vsyncpa [#allocation4], 0  ;;  %s135_s0 = inlined_call_operand.hbm [shape: f32[2], index: 0, kind: input, shape index: {}]   ;;  %s136_s1 = inlined_call_operand.vmem [shape: f32[1,128], index: 1, kind: input, shape index: {}]   ;;  %s137_s2 = inlined_call_operand.hbm [shape: f32[1,128], index: 2, kind: output, shape index: {}]  }
   0x1   :  { %8 = vsyncpa [#allocation3], 0  ;;  %s53_s11 = scalar_lea.hbm %s135_s0, 16 }
   0x2   :  { %p54_p0 = scmp.ne.s32.totalorder %s135_s0, %s53_s11  ;;  %p57_p1 = scmp.lt.u32.totalorder %s53_s11, %s135_s0 }
   0x4   :  { %p59_p2 = pnand %p57_p1, %p54_p0 }
   0x6   :  { %62 = shalt.err (!%p59_p2)
}
   0x7   :  { %s89_s16 = smov [#allocation2]  }
   0x8   :  { %16 = dma.hbm_to_smem %s135_s0, 16, %s89_s16, [#allocation4]  }
   0x9   :  { %85 = dma.done.wait [#allocation4], 16  }
   0xa   :  { %86 = vsyncadd [#allocation4], 4294967280 }
   0xb   :  { %22 = sfence }
   0xc   :  { %s23_s19 = sld [smem:[#allocation2]]  ;;  %s48_s20 = sld [smem:[#allocation2 + $0x1]]  ;;  %v25_v0 = vld [vmem:[%s136_s1] sm:$0xff] }
  0x12   :  { %v26_v1 = vstv %s23_s19  ;;  %v28_v2 = vstv %s48_s20 }
  0x13   :  { %v27_v3 = vmul.f32 %v26_v1, %v25_v0 }
  0x15   :  { %v29_v4 = vadd.f32 %v28_v2, %v27_v3 }
  0x17   :  { %30 = vst [vmem:[#allocation5] sm:$0xff] %v29_v4 }
  0x18   :  { %35 = vsyncadd [#allocation3], 112  ;;  %s90_s23 = smov [#allocation5]  }
  0x19   :  { %s36_s24 = sshll.u32 %s90_s23, 4  ;;  %s37_s24 = int_to_ptr.vmem [resolvable:$true] %s36_s24 }
  0x1a   :  { %s63_s25 = scalar_lea.vmem %s37_s24, 16  ;;  %s67_s0 = scalar_lea.vmem %s37_s24, 128 }
  0x1b   :  { %p64_p3 = scmp.ne.s32.totalorder %s37_s24, %s63_s25  ;;  %p68_p4 = scmp.lt.s32.totalorder %s37_s24, %s37_s24 }
  0x1c   :  { %p69_p5 = scmp.lt.s32.totalorder %s67_s0, %s63_s25 }
  0x1e   :  { %p70_p6 = por %p69_p5, %p68_p4 }
  0x20   :  { %p71_p7 = pnand %p70_p6, %p64_p3 }
  0x22   :  { %74 = shalt.err (!%p71_p7)
}
  0x23   :  { %s75_s1 = scalar_lea.hbm %s137_s2, 16 }
  0x24   :  { %p76_p8 = scmp.ne.s32.totalorder %s137_s2, %s75_s1  ;;  %p79_p9 = scmp.lt.u32.totalorder %s75_s1, %s137_s2 }
  0x26   :  { %p81_p10 = pnand %p79_p9, %p76_p8 }
  0x28   :  { %84 = shalt.err (!%p81_p10)
}
  0x29   :  { %s91_s4 = smov 16   ;;  %s92_s5 = smov 1  }
  0x2a   :  { %42 = dma.vmem_to_hbm [thread:$0]  %s37_s24, 16, %s137_s2, [#allocation3], %s91_s4, %s91_s4, %s92_s5  }
  0x2b   :  { %87 = dma.done.wait [#allocation3], 128  }
  0x2c   :  { %88 = vsyncadd [#allocation3], 4294967168 }
  0x2d   :  { %46 = vsyncpa [#allocation3], 1 }
  0x2e   :  { %47 = vsyncpa [#allocation4], 1 }

</bundles_post_ra>
